<compile_context>
chip_gen: v7x
topology: tpu7x:2x2x1
jax: 0.10.0
libtpu: 0.0.40
codegen_flags: <defaults>
</compile_context>

<pallas_src>
import functools

import jax
import jax.numpy as jnp
from jax import lax
from jax.experimental import pallas as pl
from jax.experimental.pallas import tpu as pltpu

STD_MIN = 1e-13  # softplus() wrapper adds this constant
LANE = 128
SUBLANE = 8


def _round_up(n, m):
    return ((n + m - 1) // m) * m


def dnn_diffusion_kernel(xt_ref, w_in_ref, w_h_ref, w_out_ref, b_ref, o_ref,
                         *, depth, width, outputsize, compute_dtype):
    """Transposed-layout MLP: activations are [features, TB] (batch on lanes)."""
    tb = xt_ref.shape[-1]

    # Hoisted bias broadcasts (kept out of the unrolled depth loop).
    # Packed biases: col 0 = b_in, col 1 = b_hidden, col 2 = b_out.
    b_in = jnp.broadcast_to(b_ref[0:width, 0:1], (width, tb))
    b_h = jnp.broadcast_to(b_ref[0:width, 1:2], (width, tb))
    b_out = jnp.broadcast_to(b_ref[0:outputsize, 2:3], (outputsize, tb))

    # Input layer:  h = W_in @ x^T + b_in          -> [width, TB]
    x = xt_ref[...].astype(compute_dtype)
    h = jnp.dot(w_in_ref[...], x, preferred_element_type=jnp.float32) + b_in

    # Shared hidden layer applied `depth` times:  h = W_h @ tanh(h) + b_h
    def body(_, h):
        a = jnp.tanh(h).astype(compute_dtype)
        return jnp.dot(w_h_ref[...], a, preferred_element_type=jnp.float32) + b_h

    unroll = True if depth <= 8 else 4
    h = lax.fori_loop(0, depth, body, h, unroll=unroll)

    # Output layer:  y = W_out @ tanh(h) + b_out   -> [outputsize, TB]
    a = jnp.tanh(h).astype(compute_dtype)
    y = jnp.dot(w_out_ref[...], a, preferred_element_type=jnp.float32) + b_out

    # PyTorch Softplus (beta=1, threshold=20): x if x > 20 else log1p(exp(x))
    sp = jnp.where(y > 20.0, y, jnp.log1p(jnp.exp(jnp.minimum(y, 20.0))))
    o_ref[...] = (sp + STD_MIN).astype(o_ref.dtype)


def prepare_dnn_params(w_in, b_in, w_h, b_h, w_out, b_out,
                       *, compute_dtype=jnp.float32):
    """Pack weights/biases ONCE (hoist out of the per-call forward).

    Weights are in PyTorch nn.Linear layout [out_features, in_features] and are
    stored in `compute_dtype` (use jnp.bfloat16 on v6e/v7x for the fast MXU
    path). Biases are packed f32 into one small (rows, 8) array:
    col 0 = b_in, col 1 = b_hidden, col 2 = b_out.
    """
    width, inputsize = w_in.shape
    outputsize = w_out.shape[0]
    assert w_h.shape == (width, width)
    assert w_out.shape == (outputsize, width)

    rows = _round_up(max(width, outputsize), SUBLANE)
    b_pack = jnp.zeros((rows, SUBLANE), jnp.float32)
    b_pack = b_pack.at[:width, 0].set(jnp.asarray(b_in, jnp.float32).reshape(-1))
    b_pack = b_pack.at[:width, 1].set(jnp.asarray(b_h, jnp.float32).reshape(-1))
    b_pack = b_pack.at[:outputsize, 2].set(
        jnp.asarray(b_out, jnp.float32).reshape(-1))

    return dict(
        w_in=jnp.asarray(w_in, compute_dtype),
        w_h=jnp.asarray(w_h, compute_dtype),
        w_out=jnp.asarray(w_out, compute_dtype),
        b_pack=b_pack,
    )


def dnn_diffusion(x, prep, *, depth, batch_tile=256):
    """x: [B, inputsize] float32; prep: output of prepare_dnn_params()."""
    w_in, w_h, w_out, b_pack = prep["w_in"], prep["w_h"], prep["w_out"], prep["b_pack"]
    width, inputsize = w_in.shape
    outputsize = w_out.shape[0]
    B = x.shape[0]
    compute_dtype = w_in.dtype

    # Batch tile on the lane axis: multiple of 128.  Keep <= batch_tile so that
    # (e.g. B=512, tb=256) the grid has >= 2 steps for megacore sharding.
    tb = max(LANE, _round_up(min(batch_tile, B), LANE))
    b_p = _round_up(B, tb)

    # Feed the kernel x^T (batch on lanes).  No lane padding of features needed;
    # only the batch is padded up to a tile multiple (no-op when B % tb == 0).
    xt = jnp.transpose(x).astype(jnp.float32)          # [inputsize, B]
    if b_p != B:
        xt = jnp.zeros((inputsize, b_p), jnp.float32).at[:, :B].set(xt)

    grid = (b_p // tb,)
    kernel = functools.partial(
        dnn_diffusion_kernel,
        depth=depth, width=width, outputsize=outputsize,
        compute_dtype=compute_dtype)

    wbytes = w_in.dtype.itemsize
    flops = 2 * b_p * (inputsize * width + depth * width * width + width * outputsize)
    transcendentals = b_p * (width * (depth + 1) + 2 * outputsize)
    bytes_accessed = (4 * inputsize * b_p + 4 * outputsize * b_p
                      + wbytes * (width * inputsize + width * width + outputsize * width)
                      + 4 * b_pack.size)

    out_t = pl.pallas_call(
        kernel,
        out_shape=jax.ShapeDtypeStruct((outputsize, b_p), jnp.float32),
        grid_spec=pltpu.PrefetchScalarGridSpec(
            num_scalar_prefetch=0,
            grid=grid,
            in_specs=[
                pl.BlockSpec((inputsize, tb), lambda i: (0, i)),   # x^T tile (pipelined)
                pl.BlockSpec(w_in.shape, lambda i: (0, 0)),        # W_in  (VMEM-resident)
                pl.BlockSpec(w_h.shape, lambda i: (0, 0)),         # W_hid (VMEM-resident)
                pl.BlockSpec(w_out.shape, lambda i: (0, 0)),       # W_out (VMEM-resident)
                pl.BlockSpec(b_pack.shape, lambda i: (0, 0)),      # packed biases (f32)
            ],
            out_specs=pl.BlockSpec((outputsize, tb), lambda i: (0, i)),
        ),
        compiler_params=pltpu.CompilerParams(
            dimension_semantics=("parallel",),  # megacore sharding on v7x
        ),
        cost_estimate=pl.CostEstimate(
            flops=int(flops),
            transcendentals=int(transcendentals),
            bytes_accessed=int(bytes_accessed),
        ),
    )(xt, w_in, w_h, w_out, b_pack)

    # Back to the module's [B, outputsize] layout (tiny: outputsize * B floats).
    return jnp.transpose(out_t[:, :B])


def init_linear(key, fan_in, fan_out):
    """nn.Linear-style init: W [out, in], b [out], U(-1/sqrt(fan_in), 1/sqrt(fan_in))."""
    kw, kb = jax.random.split(key)
    bound = 1.0 / jnp.sqrt(fan_in)
    w = jax.random.uniform(kw, (fan_out, fan_in), jnp.float32, -bound, bound)
    b = jax.random.uniform(kb, (fan_out,), jnp.float32, -bound, bound)
    return w, b


def reference_forward(x, params, depth):
    w_in, b_in, w_h, b_h, w_out, b_out = params
    hi = lax.Precision.HIGHEST
    h = jnp.dot(x, w_in.T, precision=hi) + b_in
    for _ in range(depth):
        h = jnp.dot(jnp.tanh(h), w_h.T, precision=hi) + b_h
    h = jnp.tanh(h)
    y = jnp.dot(h, w_out.T, precision=hi) + b_out
    return jax.nn.softplus(y) + STD_MIN


if __name__ == "__main__":
    # Small shapes consistent with the module (MLP on [batch, inputsize] inputs).
    # Batch 512 with batch_tile=256 -> 2 grid steps (exercises pipelining and
    # keeps both v7x TensorCores busy).
    B, inputsize, width, outputsize, depth = 512, 16, 32, 8, 4

    key = jax.random.PRNGKey(0)
    k_x, k_in, k_h, k_out = jax.random.split(key, 4)

    x = jax.random.normal(k_x, (B, inputsize), jnp.float32)
    w_in, b_in = init_linear(k_in, inputsize, width)
    w_h, b_h = init_linear(k_h, width, width)
    w_out, b_out = init_linear(k_out, width, outputsize)
    params = (w_in, b_in, w_h, b_h, w_out, b_out)

    ref = reference_forward(x, params, depth)
    fwd = jax.jit(functools.partial(dnn_diffusion, depth=depth, batch_tile=256))

    # f32 weights: safe on every generation (v5e has no bf16 VPU/EUP).
    prep_f32 = prepare_dnn_params(*params, compute_dtype=jnp.float32)
    out = jax.block_until_ready(fwd(x, prep_f32))
    assert out.shape == (B, outputsize)
    assert jnp.allclose(out, ref, atol=2e-5, rtol=1e-4), "f32 mismatch vs. reference"

    # bf16 weights / matmul inputs (v6e / v7x MXU fast path); f32 accumulation
    # and f32 elementwise math.  Looser tolerance, as flagged in the review.
    prep_bf16 = prepare_dnn_params(*params, compute_dtype=jnp.bfloat16)
    out_bf16 = jax.block_until_ready(fwd(x, prep_bf16))
    assert out_bf16.shape == (B, outputsize)
    assert jnp.allclose(out_bf16, ref, atol=1e-1, rtol=1e-1), "bf16 mismatch vs. reference"

    print("KERNEL_OK")
</pallas_src>

<mosaic_0001>
module attributes {stable_mosaic.version = 11 : i64} {
  func.func @dnn_diffusion_kernel(%arg0: i32, %arg1: memref<16x256xf32, #tpu.memory_space<vmem>>, %arg2: memref<32x16xf32, #tpu.memory_space<vmem>>, %arg3: memref<32x32xf32, #tpu.memory_space<vmem>>, %arg4: memref<8x32xf32, #tpu.memory_space<vmem>>, %arg5: memref<32x8xf32, #tpu.memory_space<vmem>>, %arg6: memref<8x256xf32, #tpu.memory_space<vmem>>) attributes {dimension_semantics = [#tpu.dimension_semantics<parallel>], iteration_bounds = array<i64: 2>, scalar_prefetch = 0 : i64, scratch_operands = 0 : i64, tpu.core_type = #tpu.core_type<tc>, window_params = [{transform_indices = @transform_0, window_bounds = array<i64: 16, 256>}, {pipeline_mode = #tpu.pipeline_mode<synchronous>, transform_indices = @transform_1, window_bounds = array<i64: 32, 16>}, {pipeline_mode = #tpu.pipeline_mode<synchronous>, transform_indices = @transform_2, window_bounds = array<i64: 32, 32>}, {pipeline_mode = #tpu.pipeline_mode<synchronous>, transform_indices = @transform_3, window_bounds = array<i64: 8, 32>}, {pipeline_mode = #tpu.pipeline_mode<synchronous>, transform_indices = @transform_4, window_bounds = array<i64: 32, 8>}, {transform_indices = @transform_5, window_bounds = array<i64: 8, 256>}]} {
    %c0 = arith.constant 0 : index
    %c0_0 = arith.constant 0 : index
    %0 = vector.load %arg5[%c0, %c0_0] : memref<32x8xf32, #tpu.memory_space<vmem>>, vector<32x1xf32>
    %1 = vector.shape_cast %0 : vector<32x1xf32> to vector<32x1xf32>
    %2 = vector.broadcast %1 : vector<32x1xf32> to vector<32x256xf32>
    %c0_1 = arith.constant 0 : index
    %c1 = arith.constant 1 : index
    %3 = vector.load %arg5[%c0_1, %c1] : memref<32x8xf32, #tpu.memory_space<vmem>>, vector<32x1xf32>
    %4 = vector.shape_cast %3 : vector<32x1xf32> to vector<32x1xf32>
    %5 = vector.broadcast %4 : vector<32x1xf32> to vector<32x256xf32>
    %c0_2 = arith.constant 0 : index
    %c2 = arith.constant 2 : index
    %6 = vector.load %arg5[%c0_2, %c2] : memref<32x8xf32, #tpu.memory_space<vmem>>, vector<8x1xf32>
    %7 = vector.shape_cast %6 : vector<8x1xf32> to vector<8x1xf32>
    %8 = vector.broadcast %7 : vector<8x1xf32> to vector<8x256xf32>
    %c0_3 = arith.constant 0 : index
    %c0_4 = arith.constant 0 : index
    %9 = vector.load %arg1[%c0_3, %c0_4] : memref<16x256xf32, #tpu.memory_space<vmem>>, vector<16x256xf32>
    %c0_5 = arith.constant 0 : index
    %c0_6 = arith.constant 0 : index
    %10 = vector.load %arg2[%c0_5, %c0_6] : memref<32x16xf32, #tpu.memory_space<vmem>>, vector<32x16xf32>
    %cst = arith.constant dense<0.000000e+00> : vector<32x256xf32>
    %11 = tpu.matmul %10, %9, %cst {dimension_numbers = #tpu.dot_dimension_numbers<[1], [0], [0], [1], [0, 0, 1, 1], [], []>} : vector<32x16xf32>, vector<16x256xf32>, vector<32x256xf32> -> vector<32x256xf32>
    %12 = arith.addf %11, %2 : vector<32x256xf32>
    %c0_i32 = arith.constant 0 : i32
    %13 = math.tanh %12 : vector<32x256xf32>
    %c0_7 = arith.constant 0 : index
    %c0_8 = arith.constant 0 : index
    %14 = vector.load %arg3[%c0_7, %c0_8] : memref<32x32xf32, #tpu.memory_space<vmem>>, vector<32x32xf32>
    %cst_9 = arith.constant dense<0.000000e+00> : vector<32x256xf32>
    %15 = tpu.matmul %14, %13, %cst_9 {dimension_numbers = #tpu.dot_dimension_numbers<[1], [0], [0], [1], [0, 0, 1, 1], [], []>} : vector<32x32xf32>, vector<32x256xf32>, vector<32x256xf32> -> vector<32x256xf32>
    %16 = arith.addf %15, %5 : vector<32x256xf32>
    %c1_i32 = arith.constant 1 : i32
    %17 = math.tanh %16 : vector<32x256xf32>
    %c0_10 = arith.constant 0 : index
    %c0_11 = arith.constant 0 : index
    %18 = vector.load %arg3[%c0_10, %c0_11] : memref<32x32xf32, #tpu.memory_space<vmem>>, vector<32x32xf32>
    %cst_12 = arith.constant dense<0.000000e+00> : vector<32x256xf32>
    %19 = tpu.matmul %18, %17, %cst_12 {dimension_numbers = #tpu.dot_dimension_numbers<[1], [0], [0], [1], [0, 0, 1, 1], [], []>} : vector<32x32xf32>, vector<32x256xf32>, vector<32x256xf32> -> vector<32x256xf32>
    %20 = arith.addf %19, %5 : vector<32x256xf32>
    %c2_i32 = arith.constant 2 : i32
    %21 = math.tanh %20 : vector<32x256xf32>
    %c0_13 = arith.constant 0 : index
    %c0_14 = arith.constant 0 : index
    %22 = vector.load %arg3[%c0_13, %c0_14] : memref<32x32xf32, #tpu.memory_space<vmem>>, vector<32x32xf32>
    %cst_15 = arith.constant dense<0.000000e+00> : vector<32x256xf32>
    %23 = tpu.matmul %22, %21, %cst_15 {dimension_numbers = #tpu.dot_dimension_numbers<[1], [0], [0], [1], [0, 0, 1, 1], [], []>} : vector<32x32xf32>, vector<32x256xf32>, vector<32x256xf32> -> vector<32x256xf32>
    %24 = arith.addf %23, %5 : vector<32x256xf32>
    %c3_i32 = arith.constant 3 : i32
    %25 = math.tanh %24 : vector<32x256xf32>
    %c0_16 = arith.constant 0 : index
    %c0_17 = arith.constant 0 : index
    %26 = vector.load %arg3[%c0_16, %c0_17] : memref<32x32xf32, #tpu.memory_space<vmem>>, vector<32x32xf32>
    %cst_18 = arith.constant dense<0.000000e+00> : vector<32x256xf32>
    %27 = tpu.matmul %26, %25, %cst_18 {dimension_numbers = #tpu.dot_dimension_numbers<[1], [0], [0], [1], [0, 0, 1, 1], [], []>} : vector<32x32xf32>, vector<32x256xf32>, vector<32x256xf32> -> vector<32x256xf32>
    %28 = arith.addf %27, %5 : vector<32x256xf32>
    %29 = math.tanh %28 : vector<32x256xf32>
    %c0_19 = arith.constant 0 : index
    %c0_20 = arith.constant 0 : index
    %30 = vector.load %arg4[%c0_19, %c0_20] : memref<8x32xf32, #tpu.memory_space<vmem>>, vector<8x32xf32>
    %cst_21 = arith.constant dense<0.000000e+00> : vector<8x256xf32>
    %31 = tpu.matmul %30, %29, %cst_21 {dimension_numbers = #tpu.dot_dimension_numbers<[1], [0], [0], [1], [0, 0, 1, 1], [], []>} : vector<8x32xf32>, vector<32x256xf32>, vector<8x256xf32> -> vector<8x256xf32>
    %32 = arith.addf %31, %8 : vector<8x256xf32>
    %cst_22 = arith.constant 2.000000e+01 : f32
    %33 = vector.broadcast %cst_22 : f32 to vector<8x256xf32>
    %34 = arith.cmpf ogt, %32, %33 : vector<8x256xf32>
    %cst_23 = arith.constant 2.000000e+01 : f32
    %35 = vector.broadcast %cst_23 : f32 to vector<8x256xf32>
    %36 = arith.minimumf %32, %35 : vector<8x256xf32>
    %37 = math.exp %36 : vector<8x256xf32>
    %38 = math.log1p %37 : vector<8x256xf32>
    %39 = arith.select %34, %32, %38 : vector<8x256xi1>, vector<8x256xf32>
    %cst_24 = arith.constant 9.99999982E-14 : f32
    %40 = vector.broadcast %cst_24 : f32 to vector<8x256xf32>
    %41 = arith.addf %39, %40 : vector<8x256xf32>
    %c0_25 = arith.constant 0 : index
    %c0_26 = arith.constant 0 : index
    %42 = vector.load %arg6[%c0_25, %c0_26] : memref<8x256xf32, #tpu.memory_space<vmem>>, vector<8x256xf32>
    tpu.vector_store %arg6[%c0_25, %c0_26], %41 {strides = array<i32>} : memref<8x256xf32, #tpu.memory_space<vmem>>, vector<8x256xf32>,
    return
  }
  func.func @transform_0(%arg0: i32) -> (i32, i32) {
    %c0_i32 = arith.constant 0 : i32
    %c0_i32_0 = arith.constant 0 : i32
    return %c0_i32, %arg0 : i32, i32
  }
  func.func @transform_1(%arg0: i32) -> (i32, i32) {
    %c0_i32 = arith.constant 0 : i32
    %c0_i32_0 = arith.constant 0 : i32
    %c0_i32_1 = arith.constant 0 : i32
    return %c0_i32, %c0_i32_0 : i32, i32
  }
  func.func @transform_2(%arg0: i32) -> (i32, i32) {
    %c0_i32 = arith.constant 0 : i32
    %c0_i32_0 = arith.constant 0 : i32
    %c0_i32_1 = arith.constant 0 : i32
    return %c0_i32, %c0_i32_0 : i32, i32
  }
  func.func @transform_3(%arg0: i32) -> (i32, i32) {
    %c0_i32 = arith.constant 0 : i32
    %c0_i32_0 = arith.constant 0 : i32
    %c0_i32_1 = arith.constant 0 : i32
    return %c0_i32, %c0_i32_0 : i32, i32
  }
  func.func @transform_4(%arg0: i32) -> (i32, i32) {
    %c0_i32 = arith.constant 0 : i32
    %c0_i32_0 = arith.constant 0 : i32
    %c0_i32_1 = arith.constant 0 : i32
    return %c0_i32, %c0_i32_0 : i32, i32
  }
  func.func @transform_5(%arg0: i32) -> (i32, i32) {
    %c0_i32 = arith.constant 0 : i32
    %c0_i32_0 = arith.constant 0 : i32
    return %c0_i32, %arg0 : i32, i32
  }
}

</mosaic_0001>

<bundles_post_ra>
// kernel: dnn_diffusion.1
= control target key start
LH: loop header
LB: loop body
LE: loop exit
PB: predicated region body
PF: predicated region fallthrough
CT: control target
= control target key end

     0   :  { %10 = vsyncpa [#allocation4], 0  ;;  %s1688_s0 = inlined_call_operand.vmem [shape: f32[16,512], index: 0, kind: input, shape index: {}]   ;;  %s1689_s1 = inlined_call_operand.vmem [shape: f32[32,16], index: 1, kind: input, shape index: {}]   ;;  %s1690_s2 = inlined_call_operand.hbm [shape: f32[32,32], index: 2, kind: input, shape index: {}]   ;;  %s1691_s3 = inlined_call_operand.vmem [shape: f32[8,32], index: 3, kind: input, shape index: {}]   ;;  %s1692_s4 = inlined_call_operand.vmem [shape: f32[32,8], index: 4, kind: input, shape index: {}]   ;;  %s1693_s5 = inlined_call_operand.hbm [shape: f32[8,512], index: 5, kind: output, shape index: {}]  }
   0x1   :  { %11 = vsyncpa [#allocation5], 0 }
   0x2   :  { %13 = vsyncpa [#allocation5 + $0x1], 0  ;;  %s1403_s18 = smov 0   ;;  %s1405_s19 = smov 0  }
   0x3   :  { %s1407_s20 = smov 0   ;;  %s1409_s21 = smov 0  }
   0x4 LB: > { %s1424_s22 = sadd.s32 4294967295, %s1363_s21   ;;  %s1034_s23 = sadd.s32 4294967294, %s1363_s21   ;;  %s1363_s21 = sphi %s1409_s21, %s1711_s21   ;;  %s1359_s20 = sphi %s1407_s20, %s1710_s20   ;;  %s1355_s19 = sphi %s1405_s19, %s1709_s19   ;;  %s1351_s18 = sphi %s1403_s18, %s1708_s18  }
   0x5   : > { %s1428_s24 = sadd.s32 1, %s1363_s21   ;;  %s26_s25 = sadd.s32 1, %s1359_s20 }
   0x6   : > { %s23_s26 = ssub.s32 %s1363_s21, %s1428_s24  ;;  %p33_p0 = scmp.ne.s32.totalorder %s1359_s20, %s1355_s19 }
   0x7   : > { %p24_p1 = scmp.eq.s32.totalorder %s23_s26, 0  ;;  %p34_p2 = scmp.eq.s32.totalorder %s1363_s21, 0 }
   0x8   : > { %p147_p3 = scmp.eq.s32.totalorder %s1424_s22, 1  ;;  %p152_p4 = scmp.ne.s32.totalorder %s1355_s19, %s1351_s18 }
   0x9   : > { %s1440_s27 = scalar_select %p24_p1, %s1359_s20, %s26_s25  }
   0xa   : > { %p1442_p5 = por %p34_p2, %p33_p0  ;;  %p1446_p6 = por %p147_p3, %p33_p0 }
   0xb   : > { %p153_p7 = scmp.eq.s32.totalorder %s1034_s23, 1  ;;  %p1035_p8 = scmp.ge.s32.totalorder %s1363_s21, 1 }
   0xc   : > { %s1697_s28 = scalar_select %p1442_p5, 1, 0 }
   0xd   : > { %s1698_s29 = scalar_select %p1446_p6, 1, 0 }
   0xe   : > { %p160_p9 = scmp.lt.s32.totalorder %s1363_s21, 3  ;;  %p1452_p10 = por %p153_p7, %p152_p4 }
   0xf   : > { %p1694_p11 = scmp.eq.s32.totalorder %s1424_s22, 0  ;;  %s1365_s7 = smov [#allocation3]  }
  0x10   : > { %s1699_s30 = scalar_select %p1452_p10, 1, 0 }
  0x11   : > { %p1457_p12 = pnand %p1035_p8, %p160_p9  ;;  %s175_s8 = sshll.u32 %s1365_s7, 4  ;;  %s176_s8 = int_to_ptr.vmem [resolvable:$true] %s175_s8 }
  0x12   : > { %s1269_s12 = scalar_lea.hbm %s1690_s2, 512 }
  0x13   : > { %s1700_s6 = scalar_select %p1457_p12, 1, 0 }
  0x14   : > { %p1125_p13 = pneg %p1457_p12  ;;  %p1270_p1 = scmp.ne.s32.totalorder %s1690_s2, %s1269_s12 }
  0x15   : > { %p1276_p7 = scmp.lt.u32.totalorder %s1269_s12, %s1690_s2 }
  0x16   : > { %p1465_p0 = pnand %p1694_p11, %p1125_p13 }
  0x18   : > { %p1271_p2 = pneg %p1465_p0 }
  0x1a   : > { %p1272_p3 = pnand %p1271_p2, %p1270_p1 }
  0x1c   : > { %p1273_p4 = pneg %p1272_p3 }
  0x1e   : > { %p1278_p8 = pnand %p1276_p7, %p1273_p4 }
  0x20   : > { %1281 = shalt.err (!%p1278_p8)
}
  0x21   : > { %s1282_s17 = scalar_lea.vmem %s176_s8, 512  ;;  %p1290_p10 = scmp.lt.s32.totalorder %s176_s8, %s176_s8 }
  0x22   : > { %p1283_p9 = scmp.ne.s32.totalorder %s176_s8, %s1282_s17  ;;  %p1291_p6 = scmp.lt.s32.totalorder %s1282_s17, %s1282_s17 }
  0x24   : > { %p1285_p13 = pnand %p1283_p9, %p1271_p2  ;;  %p1292_p12 = por %p1291_p6, %p1290_p10 }
  0x26   : > { %p1286_p11 = pneg %p1285_p13 }
  0x28   : > { %p1293_p5 = pnand %p1292_p12, %p1286_p11 }
  0x2a   : > { %1296 = shalt.err (!%p1293_p5)
}
  0x2b   : > { %s1366_s23 = smov 128   ;;  %s1367_s25 = smov 8  }
  0x2c   : > { %1128 = dma.hbm_to_vmem [thread:$0]  (!%p1465_p0), %s1690_s2, 512, %s176_s8, [#allocation4], %s1366_s23, %s1366_s23, %s1367_s25  }
  0x2d   : > { %p1037_p1 = scmp.ge.s32.totalorder %s1363_s21, 2 }
  0x2e   : > { %p1702_p2 = scmp.ne.s32.totalorder (!%p1037_p1), %s1697_s28, 0 }
  0x2f   : > { %191 = sbr.rel (%p1037_p1) target bundleno = 61 (0x3d), region = 32 }
  0x36   : > { %194 = sbr.rel (!%p1702_p2) target bundleno = 61 (0x3d), region = 36  ;;  %s196_s10 = sand.u32 (%p1702_p2), 1, %s1359_s20  }
  0x37   : > { %s1071_s11 = sshll.u32 (%p1702_p2), %s1363_s21, 4  ;;  %s1038_s12 = sshll.u32 (%p1702_p2), %s196_s10, 5 }
  0x38   : > { %s201_s9 = scalar_lea.vmem (%p1702_p2), %s1688_s0, %s1071_s11  ;;  %s198_s8 = scalar_lea.vmem (%p1702_p2), [#allocation2], %s1038_s12 }
  0x39   : > { %v214_v0 = vld [vmem:[%s201_s9] sm:$0xff] (%p1702_p2)  ;;  %v216_v1 = vld [vmem:[%s201_s9 + $0x8] sm:$0xff] (%p1702_p2) }
  0x3a   : > { %v218_v2 = vld [vmem:[%s201_s9 + $0x20] sm:$0xff] (%p1702_p2)  ;;  %215 = vst [vmem:[%s198_s8] sm:$0xff] (%p1702_p2), %v214_v0  ;;  %217 = vst [vmem:[%s198_s8 + $0x8] sm:$0xff] (%p1702_p2), %v216_v1  ;;  %v220_v3 = vld [vmem:[%s201_s9 + $0x28] sm:$0xff] (%p1702_p2) }
  0x3b   : > { %219 = vst [vmem:[%s198_s8 + $0x10] sm:$0xff] (%p1702_p2), %v218_v2  ;;  %221 = vst [vmem:[%s198_s8 + $0x18] sm:$0xff] (%p1702_p2), %v220_v3 }
  0x3d PF: > { %p1703_p5 = scmp.ne.s32.totalorder %s1700_s6, 0 }
  0x3e   : > { %s1498_s28 = sand.u32 (!%p1703_p5), 1, %s1355_s19   ;;  %p1704_p6 = scmp.eq.s32.totalorder (!%p1703_p5), %s1424_s22, 0 }
  0x3f   : > { %230 = sbr.rel (%p1703_p5) target bundleno = 1558 (0x616), region = 59  ;;  %s1042_s15 = sshll.u32 (!%p1703_p5), %s1498_s28, 5 }
  0x40   : > { %s235_s16 = scalar_lea.vmem (!%p1703_p5), [#allocation2], %s1042_s15 }
  0x46   : > { %1342 = dma.done.wait (%p1704_p6), [#allocation4], 512   ;;  %p1705_p10 = pmov %p1704_p6 }
  0x47   : > { %v1368_v4 = vmov 0.0   ;;  %v1369_v5 = vmov 0   ;;  %v313_v6 = vld [vmem:[%s235_s16 + $0x8] sm:$0xff]  ;;  %v315_v7 = vld [vmem:[%s235_s16 + $0x18] sm:$0xff]  ;;  %v312_v8 = vld [vmem:[%s235_s16] sm:$0xff]  ;;  %vm320_vm0 = vcmask 130048  }
  0x48   : > { %1344 = vsyncadd (%p1705_p10), [#allocation4], 4294966784  ;;  %397 = vmatprep.mubr.f32.mxu0 %v1368_v4  ;;  %409 = vmatprep.mubr.f32.mxu1 %v1368_v4  ;;  %v1073_v9 = vpack.c.bf16 %v315_v7, %v313_v6  ;;  %v314_v10 = vld [vmem:[%s235_s16 + $0x10] sm:$0xff]  ;;  %v1510_v12 = vld [vmem:[%s1692_s4] sm:$0xff]  ;;  %v1370_v20 = vmov 1   ;;  %vm434_vm1 = vcmask 261120  }
  0x49   : > { %1175 = vset.pattern.permute.xlu0 %v1369_v5  ;;  %1176 = vset.pattern.permute.xlu1 %v1369_v5  ;;  %v1075_v11 = vpack.c.bf16 %v314_v10, %v312_v8  ;;  %v268_v13 = vld [vmem:[%s1692_s4 + $0x10] sm:$0xff]  ;;  %v316_v14 = vld [vmem:[%s1689_s1] sm:$0xff]  ;;  %v267_v16 = vld [vmem:[%s1692_s4 + $0x8] sm:$0xff]  ;;  %s1044_s25 = sshll.u32 %s1498_s28, 4  ;;  %s1072_s26 = sshll.u32 %s1424_s22, 8 }
  0x4a   : > { %1074 = vmatprep.subr.bf16.mxu0 %v1073_v9  ;;  %1117 = vmatprep.subr.bf16.mxu1 %v1073_v9  ;;  %v318_v15 = vld [vmem:[%s1689_s1 + $0x10] sm:$0xff]  ;;  %v269_v17 = vld [vmem:[%s1692_s4 + $0x18] sm:$0xff]  ;;  %v317_v18 = vld [vmem:[%s1689_s1 + $0x8] sm:$0xff]  ;;  %s263_s7 = scalar_lea.vmem [#allocation6], %s1044_s25  ;;  %s1644_s13 = scalar_lea.hbm %s1693_s5, %s1072_s26 }
  0x4b   : > { %1076 = vmatpush1.bf16.msra.mxu0 %v1075_v11  ;;  %1118 = vmatpush1.bf16.msra.mxu1 %v1075_v11  ;;  %v319_v19 = vld [vmem:[%s1689_s1 + $0x18] sm:$0xff]  ;;  %v1539_v53 = vld [vmem:[#allocation3] sm:$0xff]  ;;  %v1544_v54 = vld [vmem:[#allocation3 + $0x8] sm:$0xff]  ;;  %s957_s10 = sshll.u32 %s263_s7, 4  ;;  %s943_s22 = scalar_lea.sflag [#allocation5], %s1498_s28  ;;  %s1646_s10 = int_to_ptr.vmem [resolvable:$true] %s957_s10 }
  0x4c   : > { %272 = vperm.xlu0 %1175, %v1510_v12   ;;  %282 = vperm.xlu1 %1176, %v268_v13   ;;  %v1549_v55 = vld [vmem:[#allocation3 + $0x10] sm:$0xff]  ;;  %v1554_v56 = vld [vmem:[#allocation3 + $0x18] sm:$0xff]  ;;  %s1297_s14 = scalar_lea.vmem %s1646_s10, 256  ;;  %p1706_p12 = scmp.ne.s32.totalorder %s1698_s29, 0 }
  0x4d   : > { %p1298_p11 = scmp.ne.s32.totalorder %s1646_s10, %s1297_s14  ;;  %s1372_s9 = smov [#allocation6]  }
  0x4e   : > { %1045 = vmatmul.mubr.msk.f32.vlgmr.msra.gmra.mrb[0].mxu0 %vm320_vm0, %v316_v14  ;;  %1047 = vmatmul.mubr.msk.f32.vlgmr.msra.gmra.mrb[0].mxu1 %vm320_vm0, %v318_v15  ;;  %s1301_s8 = sshll.u32 %s1372_s9, 4  ;;  %s1302_s8 = int_to_ptr.vmem [resolvable:$false] %s1301_s8 }
  0x4f   : > { %403 = vmatprep.mubr.f32.mxu0 %v1368_v4  ;;  %415 = vmatprep.mubr.f32.mxu1 %v1368_v4  ;;  %p1299_p0 = pnand %p1298_p11, %p1706_p12  ;;  %s1303_s15 = scalar_lea.vmem %s1302_s8, 512 }
  0x50   : > { %277 = vperm.xlu0 %1175, %v267_v16   ;;  %287 = vperm.xlu1 %1176, %v269_v17   ;;  %p1304_p4 = scmp.lt.s32.totalorder %s1646_s10, %s1302_s8  ;;  %p1305_p7 = scmp.lt.s32.totalorder %s1303_s15, %s1297_s14 }
  0x51   : > { %p1300_p3 = pneg %p1299_p0 }
  0x52   : > { %1046 = vmatmul.mubr.msk.f32.gmra.mrb[2].mxu0 %vm320_vm0, %v317_v18  ;;  %1048 = vmatmul.mubr.msk.f32.gmra.mrb[2].mxu1 %vm320_vm0, %v319_v19  ;;  %p1306_p8 = por %p1305_p7, %p1304_p4 }
  0x53   : > { %511 = vmatprep.mubr.f32.mxu1 %v1368_v4  ;;  %608 = vmatprep.mubr.f32.mxu0 %v1368_v4 }
  0x54   : > { %1177 = vset.pattern.permute.xlu0 %v1370_v20  ;;  %1178 = vset.pattern.permute.xlu1 %v1370_v20  ;;  %p1307_p9 = pnand %p1306_p8, %p1300_p3 }
  0x55   : > { %291 = vperm.xlu0 %1177, %v1510_v12   ;;  %295 = vperm.xlu1 %1178, %v267_v16  }
  0x59   : > { %299 = vperm.xlu1 %1178, %v268_v13   ;;  %303 = vperm.xlu0 %1177, %v269_v17  }
  0xcb   : > { %v283_v21 = vpop.permute.xlu1 %282  ;;  %v273_v22 = vpop.permute.xlu0 %272 }
  0xcf   : > { %v288_v31 = vpop.permute.xlu1 %287  ;;  %v278_v32 = vpop.permute.xlu0 %277 }
  0xd4   : > { %v1559_v57 = vpop.permute.xlu0 %291  ;;  %v1561_v59 = vpop.permute.xlu1 %295 }
  0xd8   : > { %v1567_v3 = vpop.permute.xlu1 %299  ;;  %v1571_v9 = vpop.permute.xlu0 %303 }
 0x121   : > { %v399_v23 = vpop.f32.mrb[0].mxu0  ;;  %v411_v24 = vpop.f32.mrb[0].mxu1 }
 0x122   : > { %v400_v25 = vadd.f32 %v399_v23, %v273_v22  ;;  %v401_v26 = vpop.f32.mrb[1].mxu0  ;;  %v412_v27 = vadd.f32 %v411_v24, %v283_v21  ;;  %v413_v28 = vpop.f32.mrb[1].mxu1 }
 0x123   : > { %v402_v29 = vadd.f32 %v401_v26, %v273_v22  ;;  %v414_v30 = vadd.f32 %v413_v28, %v283_v21 }
 0x124   : > { %1181 = vtanh.f32 %v400_v25 }
 0x125   : > { %1183 = vtanh.f32 %v402_v29  ;;  %v405_v33 = vpop.f32.mrb[2].mxu0  ;;  %v417_v34 = vpop.f32.mrb[2].mxu1 }
 0x126   : > { %1185 = vtanh.f32 %v412_v27  ;;  %v406_v35 = vadd.f32 %v405_v33, %v278_v32  ;;  %v418_v36 = vadd.f32 %v417_v34, %v288_v31  ;;  %v407_v37 = vpop.f32.mrb[3].mxu0  ;;  %v419_v38 = vpop.f32.mrb[3].mxu1 }
 0x127   : > { %1187 = vtanh.f32 %v414_v30  ;;  %v408_v39 = vadd.f32 %v407_v37, %v278_v32  ;;  %v420_v40 = vadd.f32 %v419_v38, %v288_v31 }
 0x128   : > { %1189 = vtanh.f32 %v406_v35 }
 0x129   : > { %1191 = vtanh.f32 %v418_v36 }
 0x12a   : > { %1193 = vtanh.f32 %v408_v39 }
 0x12b   : > { %1195 = vtanh.f32 %v420_v40 }
 0x12e   : > { %v1182_v41 = vpop.eup %1181 }
 0x12f   : > { %v1184_v42 = vpop.eup %1183 }
 0x130   : > { %v1186_v43 = vpop.eup %1185 }
 0x131   : > { %v1188_v44 = vpop.eup %1187 }
 0x132   : > { %v1190_v45 = vpop.eup %1189 }
 0x133   : > { %v1192_v46 = vpop.eup %1191  ;;  %v1079_v47 = vpack.c.bf16 %v1190_v45, %v1182_v41 }
 0x134   : > { %v1194_v48 = vpop.eup %1193  ;;  %v1083_v49 = vpack.c.bf16 %v1192_v46, %v1186_v43 }
 0x135   : > { %v1196_v50 = vpop.eup %1195  ;;  %v1077_v51 = vpack.c.bf16 %v1194_v48, %v1184_v42 }
 0x136   : > { %v1081_v52 = vpack.c.bf16 %v1196_v50, %v1188_v44 }
 0x137   : > { %1078 = vmatprep.subr.bf16.mxu1 %v1077_v51 }
 0x138   : > { %1080 = vmatpush1.bf16.msra.mxu1 %v1079_v47 }
 0x139   : > { %1082 = vmatprep.subr.bf16.mxu1 %v1081_v52 }
 0x13c   : > { %1084 = vmatpush1.bf16.msra.mxu1 %v1083_v49 }
 0x13f   : > { %1049 = vmatmul.mubr.msk.f32.vlgmr.msra.gmra.mrb[4].mxu1 %vm434_vm1, %v1539_v53 }
 0x140   : > { %517 = vmatprep.mubr.f32.mxu1 %v1368_v4 }
 0x143   : > { %1050 = vmatmul.mubr.msk.f32.gmra.mrb[6].mxu1 %vm434_vm1, %v1544_v54 }
 0x144   : > { %523 = vmatprep.mubr.f32.mxu1 %v1368_v4 }
 0x147   : > { %1051 = vmatmul.mubr.msk.f32.gmra.mrb[8].mxu1 %vm434_vm1, %v1549_v55 }
 0x148   : > { %529 = vmatprep.mubr.f32.mxu1 %v1368_v4 }
 0x14b   : > { %1052 = vmatmul.mubr.msk.f32.gmra.mrb[10].mxu1 %vm434_vm1, %v1554_v56 }
 0x14c   : > { %705 = vmatprep.mubr.f32.mxu1 %v1368_v4 }
 0x212   : > { %v513_v58 = vpop.f32.mrb[4].mxu1 }
 0x213   : > { %v515_v60 = vpop.f32.mrb[5].mxu1  ;;  %v514_v61 = vadd.f32 %v513_v58, %v1559_v57 }
 0x214   : > { %v516_v62 = vadd.f32 %v515_v60, %v1559_v57 }
 0x215   : > { %1197 = vtanh.f32 %v514_v61 }
 0x216   : > { %v519_v63 = vpop.f32.mrb[6].mxu1  ;;  %1199 = vtanh.f32 %v516_v62 }
 0x217   : > { %v520_v0 = vadd.f32 %v519_v63, %v1561_v59  ;;  %v521_v1 = vpop.f32.mrb[7].mxu1 }
 0x218   : > { %v522_v2 = vadd.f32 %v521_v1, %v1561_v59 }
 0x219   : > { %1201 = vtanh.f32 %v520_v0 }
 0x21a   : > { %1203 = vtanh.f32 %v522_v2  ;;  %v525_v5 = vpop.f32.mrb[8].mxu1 }
 0x21b   : > { %v526_v6 = vadd.f32 %v525_v5, %v1567_v3  ;;  %v527_v7 = vpop.f32.mrb[9].mxu1 }
 0x21c   : > { %v528_v8 = vadd.f32 %v527_v7, %v1567_v3 }
 0x21d   : > { %1205 = vtanh.f32 %v526_v6 }
 0x21e   : > { %v531_v10 = vpop.f32.mrb[10].mxu1  ;;  %1207 = vtanh.f32 %v528_v8 }
 0x21f   : > { %v532_v11 = vadd.f32 %v531_v10, %v1571_v9  ;;  %v533_v13 = vpop.f32.mrb[11].mxu1  ;;  %v1198_v15 = vpop.eup %1197 }
 0x220   : > { %v534_v14 = vadd.f32 %v533_v13, %v1571_v9  ;;  %v1200_v16 = vpop.eup %1199 }
 0x221   : > { %1209 = vtanh.f32 %v532_v11 }
 0x222   : > { %1211 = vtanh.f32 %v534_v14 }
 0x223   : > { %v1202_v17 = vpop.eup %1201 }
 0x224   : > { %v1204_v18 = vpop.eup %1203  ;;  %v1087_v19 = vpack.c.bf16 %v1202_v17, %v1198_v15 }
 0x225   : > { %v1085_v20 = vpack.c.bf16 %v1204_v18, %v1200_v16 }
 0x227   : > { %1086 = vmatprep.subr.bf16.mxu0 %v1085_v20  ;;  %v1206_v21 = vpop.eup %1205 }
 0x228   : > { %1088 = vmatpush1.bf16.msra.mxu0 %v1087_v19  ;;  %v1208_v22 = vpop.eup %1207 }
 0x22b   : > { %v1210_v23 = vpop.eup %1209 }
 0x22c   : > { %v1212_v24 = vpop.eup %1211  ;;  %v1091_v25 = vpack.c.bf16 %v1210_v23, %v1206_v21 }
 0x22d   : > { %v1089_v26 = vpack.c.bf16 %v1212_v24, %v1208_v22 }
 0x22f   : > { %1090 = vmatprep.subr.bf16.mxu0 %v1089_v26 }
 0x230   : > { %1092 = vmatpush1.bf16.msra.mxu0 %v1091_v25 }
 0x233   : > { %1053 = vmatmul.mubr.msk.f32.vlgmr.msra.gmra.mrb[4].mxu0 %vm434_vm1, %v1539_v53 }
 0x234   : > { %614 = vmatprep.mubr.f32.mxu0 %v1368_v4 }
 0x237   : > { %1054 = vmatmul.mubr.msk.f32.gmra.mrb[6].mxu0 %vm434_vm1, %v1544_v54 }
 0x238   : > { %620 = vmatprep.mubr.f32.mxu0 %v1368_v4 }
 0x23b   : > { %1055 = vmatmul.mubr.msk.f32.gmra.mrb[8].mxu0 %vm434_vm1, %v1549_v55 }
 0x23c   : > { %626 = vmatprep.mubr.f32.mxu0 %v1368_v4 }
 0x23f   : > { %1056 = vmatmul.mubr.msk.f32.gmra.mrb[10].mxu0 %vm434_vm1, %v1554_v56 }
 0x240   : > { %802 = vmatprep.mubr.f32.mxu0 %v1368_v4 }
 0x306   : > { %v610_v27 = vpop.f32.mrb[4].mxu0 }
 0x307   : > { %v611_v28 = vadd.f32 %v610_v27, %v1559_v57  ;;  %v612_v29 = vpop.f32.mrb[5].mxu0 }
 0x308   : > { %v613_v30 = vadd.f32 %v612_v29, %v1559_v57  ;;  %v1371_v29 = vmov 2  }
 0x309   : > { %1213 = vtanh.f32 %v611_v28  ;;  %1179 = vset.pattern.permute.xlu1 %v1371_v29  ;;  %1180 = vset.pattern.permute.xlu0 %v1371_v29 }
 0x30a   : > { %v616_v31 = vpop.f32.mrb[6].mxu0  ;;  %1215 = vtanh.f32 %v613_v30  ;;  %309 = vperm.xlu1 %1179, %v1510_v12  }
 0x30b   : > { %v617_v32 = vadd.f32 %v616_v31, %v1561_v59  ;;  %v618_v33 = vpop.f32.mrb[7].mxu0 }
 0x30c   : > { %v619_v34 = vadd.f32 %v618_v33, %v1561_v59 }
 0x30d   : > { %1217 = vtanh.f32 %v617_v32 }
 0x30e   : > { %1219 = vtanh.f32 %v619_v34  ;;  %v622_v35 = vpop.f32.mrb[8].mxu0 }
 0x30f   : > { %v623_v36 = vadd.f32 %v622_v35, %v1567_v3  ;;  %v624_v37 = vpop.f32.mrb[9].mxu0 }
 0x310   : > { %v625_v38 = vadd.f32 %v624_v37, %v1567_v3 }
 0x311   : > { %1221 = vtanh.f32 %v623_v36 }
 0x312   : > { %v628_v39 = vpop.f32.mrb[10].mxu0  ;;  %1223 = vtanh.f32 %v625_v38 }
 0x313   : > { %v629_v40 = vadd.f32 %v628_v39, %v1571_v9  ;;  %v630_v41 = vpop.f32.mrb[11].mxu0  ;;  %v1214_v43 = vpop.eup %1213 }
 0x314   : > { %v631_v42 = vadd.f32 %v630_v41, %v1571_v9  ;;  %v1216_v44 = vpop.eup %1215 }
 0x315   : > { %1225 = vtanh.f32 %v629_v40 }
 0x316   : > { %1227 = vtanh.f32 %v631_v42 }
 0x317   : > { %v1218_v45 = vpop.eup %1217 }
 0x318   : > { %v1220_v46 = vpop.eup %1219  ;;  %v1095_v47 = vpack.c.bf16 %v1218_v45, %v1214_v43 }
 0x319   : > { %v1093_v48 = vpack.c.bf16 %v1220_v46, %v1216_v44 }
 0x31b   : > { %1094 = vmatprep.subr.bf16.mxu1 %v1093_v48  ;;  %v1222_v49 = vpop.eup %1221 }
 0x31c   : > { %1096 = vmatpush1.bf16.msra.mxu1 %v1095_v47  ;;  %v1224_v50 = vpop.eup %1223 }
 0x31f   : > { %v1226_v51 = vpop.eup %1225 }
 0x320   : > { %v1228_v52 = vpop.eup %1227  ;;  %v1099_v58 = vpack.c.bf16 %v1226_v51, %v1222_v49 }
 0x321   : > { %v1097_v60 = vpack.c.bf16 %v1228_v52, %v1224_v50 }
 0x323   : > { %1098 = vmatprep.subr.bf16.mxu1 %v1097_v60 }
 0x324   : > { %1100 = vmatpush1.bf16.msra.mxu1 %v1099_v58 }
 0x327   : > { %1057 = vmatmul.mubr.msk.f32.vlgmr.msra.gmra.mrb[12].mxu1 %vm434_vm1, %v1539_v53 }
 0x328   : > { %711 = vmatprep.mubr.f32.mxu1 %v1368_v4 }
 0x32b   : > { %1058 = vmatmul.mubr.msk.f32.gmra.mrb[14].mxu1 %vm434_vm1, %v1544_v54 }
 0x32c   : > { %717 = vmatprep.mubr.f32.mxu1 %v1368_v4 }
 0x32f   : > { %1059 = vmatmul.mubr.msk.f32.gmra.mrb[16].mxu1 %vm434_vm1, %v1549_v55 }
 0x330   : > { %723 = vmatprep.mubr.f32.mxu1 %v1368_v4 }
 0x333   : > { %1060 = vmatmul.mubr.msk.f32.gmra.mrb[18].mxu1 %vm434_vm1, %v1554_v56 }
 0x334   : > { %903 = vmatprep.mubr.f32.mxu1 %v1368_v4 }
 0x389   : > { %v310_v49 = vpop.permute.xlu1 %309 }
 0x3fa   : > { %v707_v61 = vpop.f32.mrb[12].mxu1 }
 0x3fb   : > { %v708_v62 = vadd.f32 %v707_v61, %v1559_v57  ;;  %v709_v63 = vpop.f32.mrb[13].mxu1 }
 0x3fc   : > { %v710_v0 = vadd.f32 %v709_v63, %v1559_v57 }
 0x3fd   : > { %1229 = vtanh.f32 %v708_v62 }
 0x3fe   : > { %v713_v1 = vpop.f32.mrb[14].mxu1  ;;  %1231 = vtanh.f32 %v710_v0 }
 0x3ff   : > { %v714_v2 = vadd.f32 %v713_v1, %v1561_v59  ;;  %v715_v5 = vpop.f32.mrb[15].mxu1 }
 0x400   : > { %v716_v6 = vadd.f32 %v715_v5, %v1561_v59 }
 0x401   : > { %1233 = vtanh.f32 %v714_v2 }
 0x402   : > { %1235 = vtanh.f32 %v716_v6  ;;  %v719_v7 = vpop.f32.mrb[16].mxu1 }
 0x403   : > { %v720_v8 = vadd.f32 %v719_v7, %v1567_v3  ;;  %v721_v10 = vpop.f32.mrb[17].mxu1 }
 0x404   : > { %v722_v11 = vadd.f32 %v721_v10, %v1567_v3 }
 0x405   : > { %1237 = vtanh.f32 %v720_v8 }
 0x406   : > { %v725_v13 = vpop.f32.mrb[18].mxu1  ;;  %1239 = vtanh.f32 %v722_v11 }
 0x407   : > { %v726_v14 = vadd.f32 %v725_v13, %v1571_v9  ;;  %v727_v15 = vpop.f32.mrb[19].mxu1  ;;  %v1230_v17 = vpop.eup %1229 }
 0x408   : > { %v728_v16 = vadd.f32 %v727_v15, %v1571_v9  ;;  %v1232_v18 = vpop.eup %1231 }
 0x409   : > { %1241 = vtanh.f32 %v726_v14 }
 0x40a   : > { %1243 = vtanh.f32 %v728_v16 }
 0x40b   : > { %v1234_v19 = vpop.eup %1233 }
 0x40c   : > { %v1236_v20 = vpop.eup %1235  ;;  %v1103_v21 = vpack.c.bf16 %v1234_v19, %v1230_v17 }
 0x40d   : > { %v1101_v22 = vpack.c.bf16 %v1236_v20, %v1232_v18 }
 0x40f   : > { %1102 = vmatprep.subr.bf16.mxu0 %v1101_v22  ;;  %v1238_v23 = vpop.eup %1237 }
 0x410   : > { %1104 = vmatpush1.bf16.msra.mxu0 %v1103_v21  ;;  %v1240_v24 = vpop.eup %1239 }
 0x413   : > { %v1242_v25 = vpop.eup %1241 }
 0x414   : > { %v1244_v26 = vpop.eup %1243  ;;  %v1107_v27 = vpack.c.bf16 %v1242_v25, %v1238_v23 }
 0x415   : > { %v1105_v28 = vpack.c.bf16 %v1244_v26, %v1240_v24 }
 0x417   : > { %1106 = vmatprep.subr.bf16.mxu0 %v1105_v28 }
 0x418   : > { %1108 = vmatpush1.bf16.msra.mxu0 %v1107_v27 }
 0x41b   : > { %1061 = vmatmul.mubr.msk.f32.vlgmr.msra.gmra.mrb[12].mxu0 %vm434_vm1, %v1539_v53 }
 0x41c   : > { %808 = vmatprep.mubr.f32.mxu0 %v1368_v4 }
 0x41f   : > { %1062 = vmatmul.mubr.msk.f32.gmra.mrb[14].mxu0 %vm434_vm1, %v1544_v54 }
 0x420   : > { %814 = vmatprep.mubr.f32.mxu0 %v1368_v4 }
 0x423   : > { %1063 = vmatmul.mubr.msk.f32.gmra.mrb[16].mxu0 %vm434_vm1, %v1549_v55 }
 0x424   : > { %820 = vmatprep.mubr.f32.mxu0 %v1368_v4 }
 0x427   : > { %1064 = vmatmul.mubr.msk.f32.gmra.mrb[18].mxu0 %vm434_vm1, %v1554_v56 }
 0x4ee   : > { %v804_v53 = vpop.f32.mrb[12].mxu0 }
 0x4ef   : > { %v805_v30 = vadd.f32 %v804_v53, %v1559_v57  ;;  %v806_v31 = vpop.f32.mrb[13].mxu0 }
 0x4f0   : > { %v807_v54 = vadd.f32 %v806_v31, %v1559_v57 }
 0x4f1   : > { %1245 = vtanh.f32 %v805_v30 }
 0x4f2   : > { %v810_v32 = vpop.f32.mrb[14].mxu0  ;;  %1247 = vtanh.f32 %v807_v54 }
 0x4f3   : > { %v811_v55 = vadd.f32 %v810_v32, %v1561_v59  ;;  %v812_v33 = vpop.f32.mrb[15].mxu0 }
 0x4f4   : > { %v813_v4 = vadd.f32 %v812_v33, %v1561_v59 }
 0x4f5   : > { %1249 = vtanh.f32 %v811_v55 }
 0x4f6   : > { %1251 = vtanh.f32 %v813_v4  ;;  %v816_v56 = vpop.f32.mrb[16].mxu0 }
 0x4f7   : > { %v817_v34 = vadd.f32 %v816_v56, %v1567_v3  ;;  %v818_v12 = vpop.f32.mrb[17].mxu0 }
 0x4f8   : > { %v819_v35 = vadd.f32 %v818_v12, %v1567_v3 }
 0x4f9   : > { %1253 = vtanh.f32 %v817_v34 }
 0x4fa   : > { %v822_v36 = vpop.f32.mrb[18].mxu0  ;;  %1255 = vtanh.f32 %v819_v35 }
 0x4fb   : > { %v823_v57 = vadd.f32 %v822_v36, %v1571_v9  ;;  %v824_v37 = vpop.f32.mrb[19].mxu0  ;;  %v1246_v39 = vpop.eup %1245 }
 0x4fc   : > { %v825_v38 = vadd.f32 %v824_v37, %v1571_v9  ;;  %v1248_v40 = vpop.eup %1247  ;;  %v835_v9 = vld [vmem:[%s1691_s3] sm:$0xff] }
 0x4fd   : > { %1257 = vtanh.f32 %v823_v57 }
 0x4fe   : > { %1259 = vtanh.f32 %v825_v38 }
 0x4ff   : > { %v1250_v59 = vpop.eup %1249 }
 0x500   : > { %v1252_v41 = vpop.eup %1251  ;;  %v1111_v42 = vpack.c.bf16 %v1250_v59, %v1246_v39 }
 0x501   : > { %v1109_v43 = vpack.c.bf16 %v1252_v41, %v1248_v40 }
 0x503   : > { %1110 = vmatprep.subr.bf16.mxu1 %v1109_v43  ;;  %v1254_v44 = vpop.eup %1253 }
 0x504   : > { %1112 = vmatpush1.bf16.msra.mxu1 %v1111_v42  ;;  %v1256_v3 = vpop.eup %1255 }
 0x507   : > { %v1258_v45 = vpop.eup %1257 }
 0x508   : > { %v1260_v46 = vpop.eup %1259  ;;  %v1115_v47 = vpack.c.bf16 %v1258_v45, %v1254_v44 }
 0x509   : > { %v1113_v48 = vpack.c.bf16 %v1260_v46, %v1256_v3 }
 0x50b   : > { %1114 = vmatprep.subr.bf16.mxu1 %v1113_v48 }
 0x50c   : > { %1116 = vmatpush1.bf16.msra.mxu1 %v1115_v47 }
 0x50f   : > { %1065 = vmatmul.mubr.msk.f32.vlgmr.msra.gmra.mrb[20].mxu1 %vm434_vm1, %v835_v9 }
 0x5e2   : > { %v905_v50 = vpop.f32.mrb[20].mxu1 }
 0x5e3   : > { %v906_v51 = vadd.f32 %v905_v50, %v310_v49  ;;  %v907_v52 = vpop.f32.mrb[21].mxu1 }
 0x5e4   : > { %v908_v58 = vadd.f32 %v907_v52, %v310_v49 }
 0x5e5   : > { %v912_v60 = vmin.f32 %v906_v51, 20.0  ;;  %vm910_vm3 = vcmp.gt.f32.partialorder %v906_v51, 20.0 }
 0x5e6   : > { %v913_v61 = vmin.f32 %v908_v58, 20.0  ;;  %vm911_vm5 = vcmp.gt.f32.partialorder %v908_v58, 20.0 }
 0x5e7   : > { %v914_v62 = vmul.f32 1.442695, %v912_v60 }
 0x5e8   : > { %v916_v63 = vmul.f32 1.442695, %v913_v61 }
 0x5e9   : > { %1261 = vpow2.f32 %v914_v62 }
 0x5ea   : > { %1263 = vpow2.f32 %v916_v63 }
 0x5f3   : > { %v1262_v0 = vpop.eup %1261 }
 0x5f4   : > { %v1264_v1 = vpop.eup %1263  ;;  %v918_v2 = vadd.f32 1.0, %v1262_v0  ;;  %v921_v6 = vmul.f32 -0.5, %v1262_v0  ;;  %v924_v10 = vand.u32 2147483647, %v1262_v0 }
 0x5f5   : > { %v927_v5 = vadd.f32 1.0, %v1264_v1  ;;  %v930_v7 = vmul.f32 -0.5, %v1264_v1  ;;  %v933_v13 = vand.u32 2147483647, %v1264_v1 }
 0x5f6   : > { %1265 = vlog2.f32 %v918_v2  ;;  %v922_v8 = vadd.f32 1.0, %v921_v6  ;;  %vm925_vm2 = vcmp.lt.f32.partialorder %v924_v10, 0.0004427343 }
 0x5f7   : > { %1267 = vlog2.f32 %v927_v5  ;;  %v931_v11 = vadd.f32 1.0, %v930_v7  ;;  %vm934_vm4 = vcmp.lt.f32.partialorder %v933_v13, 0.0004427343 }
 0x5f8   : > { %v923_v17 = vmul.f32 %v1262_v0, %v922_v8 }
 0x5f9   : > { %v932_v19 = vmul.f32 %v1264_v1, %v931_v11 }
 0x600   : > { %v1266_v14 = vpop.eup %1265 }
 0x601   : > { %v1268_v15 = vpop.eup %1267  ;;  %v920_v16 = vmul.f32 0.6931472, %v1266_v14 }
 0x602   : > { %v929_v18 = vmul.f32 0.6931472, %v1268_v15 }
 0x603   : > { %v926_v20 = vsel %vm925_vm2, %v923_v17, %v920_v16 }
 0x604   : > { %v936_v21 = vsel %vm910_vm3, %v906_v51, %v926_v20  ;;  %v935_v22 = vsel %vm934_vm4, %v932_v19, %v929_v18 }
 0x605   : > { %v938_v23 = vadd.f32 1e-13, %v936_v21  ;;  %v937_v24 = vsel %vm911_vm5, %v908_v58, %v935_v22 }
 0x606   : > { %v939_v25 = vadd.f32 1e-13, %v937_v24 }
 0x607   : > { %940 = vst [vmem:[%s263_s7] sm:$0xff] %v938_v23 }
 0x608   : > { %941 = vst [vmem:[%s263_s7 + $0x8] sm:$0xff] %v939_v25 }
 0x609   : > { %1310 = shalt.err (!%p1307_p9)
}
 0x60a   : > { %s1311_s28 = scalar_lea.hbm %s1644_s13, 256  ;;  %s1315_s17 = scalar_lea.hbm %s1693_s5, 512 }
 0x60b   : > { %p1312_p13 = scmp.ne.s32.totalorder %s1644_s13, %s1311_s28  ;;  %p1316_p6 = scmp.lt.u32.totalorder %s1644_s13, %s1693_s5 }
 0x60c   : > { %p1317_p10 = scmp.lt.u32.totalorder %s1315_s17, %s1311_s28  ;;  %p1319_p0 = scmp.lt.u32.totalorder %s1311_s28, %s1644_s13 }
 0x60d   : > { %p1313_p2 = pnand %p1312_p13, %p1706_p12 }
 0x60e   : > { %p1318_p11 = por %p1317_p10, %p1316_p6 }
 0x60f   : > { %p1314_p5 = pneg %p1313_p2 }
 0x610   : > { %p1320_p3 = por %p1319_p0, %p1318_p11 }
 0x612   : > { %p1321_p4 = pnand %p1320_p3, %p1314_p5 }
 0x614   : > { %1324 = shalt.err (!%p1321_p4)
}
 0x615   : > { %1123 = dma.vmem_to_hbm [thread:$0]  (%p1706_p12), %s1646_s10, 256, %s1644_s13, %s943_s22  }
 0x616 PF: > { %s969_s26 = sand.u32 1, %s1351_s18   ;;  %p1707_p7 = scmp.ne.s32.totalorder %s1699_s30, 0 }
 0x617   : > { %s970_s7 = scalar_lea.sflag [#allocation5], %s969_s26 }
 0x618   : > { %p1130_p8 = pnand %p1037_p1, %p1707_p7 }
 0x61a   : > { %1346 = dma.done.wait (!%p1130_p8), %s970_s7, 256  }
 0x61b   : > { %1348 = vsyncadd (!%p1130_p8), %s970_s7, 4294967040  ;;  %p16_p9 = scmp.ge.s32.totalorder %s1428_s24, 4   ;;  %s1708_s18 = smov %s1355_s19 }
 0x61c   : > { %s1709_s19 = smov %s1359_s20  ;;  %s1710_s20 = smov %s1440_s27 }
 0x61d   : > { %s1711_s21 = smov %s1428_s24  ;;  %18 = sbr.rel (!%p16_p9) target bundleno = 4 (0x4), region = 108 }
 0x624   :  { %975 = vsyncpa [#allocation4], 1 }
 0x625   :  { %977 = vsyncpa [#allocation4 + $0x1], 1 }
 0x626   :  { %978 = vsyncpa [#allocation5], 1 }
 0x627   :  { %980 = vsyncpa [#allocation5 + $0x1], 1 }

</bundles_post_ra>
